<compile_context>
chip_gen: v5e
topology: v5e:2x2
jax: 0.10.0
libtpu: 0.0.40
codegen_flags: <defaults>
</compile_context>

<pallas_src>
import jax
import jax.numpy as jnp
from jax.experimental import pallas as pl
from jax.experimental.pallas import tpu as pltpu

SIGMA_DATA = 0.5


def _round_up(n, m):
    return ((n + m - 1) // m) * m


def _silu(h):
    # exp and the approximate reciprocal both run on the EUP slot (free vs VALU).
    return h * pl.reciprocal(1.0 + jnp.exp(-h), approx=True)


def edm_denoiser_kernel(x_ref, sigma_ref,
                        w1x_ref, w1n_ref, b1_ref,
                        w2_ref, b2_ref,
                        w3_ref, b3_ref,
                        out_ref):
    x = x_ref[...].astype(jnp.float32)               # (TB, D)
    sigma = sigma_ref[...]                           # (TB, 1)  f32

    sd = jnp.float32(SIGMA_DATA)
    sd2 = sd * sd
    inv_sqrt = jax.lax.rsqrt(sigma * sigma + sd2)    # 1/sqrt(sigma^2 + sd^2)
    c_skip = sd2 * inv_sqrt * inv_sqrt               # == sd2 / (sigma^2 + sd^2)
    c_out = sigma * sd * inv_sqrt
    c_in = inv_sqrt
    c_noise = jnp.log(sigma) * jnp.float32(0.25)     # (TB, 1)

    # --- MLP (eval mode: dropout = identity) ---
    # layer 1: equivalent to concat([c_in*x, c_noise], -1) @ W1 + b1
    xin = (c_in * x).astype(jnp.bfloat16)
    h = jnp.dot(xin, w1x_ref[...], preferred_element_type=jnp.float32)
    h = h + (c_noise * w1n_ref[...] + b1_ref[...])   # fused epilogue add
    h = _silu(h)

    # layer 2
    # TODO(synk): K-tile w2 over an 'arbitrary' grid axis once hidden > ~2K.
    h = jnp.dot(h.astype(jnp.bfloat16), w2_ref[...],
                preferred_element_type=jnp.float32) + b2_ref[...]
    h = _silu(h)

    # layer 3 (output projection)
    f_x = jnp.dot(h.astype(jnp.bfloat16), w3_ref[...],
                  preferred_element_type=jnp.float32) + b3_ref[...]

    # --- EDM skip combine ---
    out_ref[...] = (c_skip * x + c_out * f_x).astype(out_ref.dtype)


def init_mlp_params(key, dim, hidden_dim):
    """Deterministic synthetic init of MLP(dim, hidden_dim, dropout_p) weights,
    torch.nn.Linear-style (uniform +/- 1/sqrt(fan_in)), stored (fan_in, fan_out)."""
    ks = jax.random.split(key, 6)

    def lin(kw, kb, fan_in, fan_out):
        bound = 1.0 / jnp.sqrt(jnp.float32(fan_in))
        w = jax.random.uniform(kw, (fan_in, fan_out), jnp.float32, -bound, bound)
        b = jax.random.uniform(kb, (1, fan_out), jnp.float32, -bound, bound)
        return w, b

    w1, b1 = lin(ks[0], ks[1], dim + 1, hidden_dim)   # concat input (x, c_noise)
    w2, b2 = lin(ks[2], ks[3], hidden_dim, hidden_dim)
    w3, b3 = lin(ks[4], ks[5], hidden_dim, dim)
    return (w1, b1, w2, b2, w3, b3)


def prepare_params(raw_params):
    """One-time preprocessing (call ONCE, reuse the result for every forward):
    split W1 into the x-columns and the c_noise row, zero-pad the hidden axis to
    a multiple of 128 (lane-dense, mathematically inert) and cast the three large
    matmul operands to bf16.  Per-row bias/noise vectors stay f32."""
    w1, b1, w2, b2, w3, b3 = raw_params
    dim = w1.shape[0] - 1
    hidden = w1.shape[1]
    Hp = _round_up(hidden, 128)
    ph = Hp - hidden

    w1x = jnp.pad(w1[:dim, :], ((0, 0), (0, ph))).astype(jnp.bfloat16)   # (dim, Hp)
    w1n = jnp.pad(w1[dim:dim + 1, :], ((0, 0), (0, ph)))                 # (1, Hp)
    b1p = jnp.pad(b1, ((0, 0), (0, ph)))                                 # (1, Hp)
    w2p = jnp.pad(w2, ((0, ph), (0, ph))).astype(jnp.bfloat16)           # (Hp, Hp)
    b2p = jnp.pad(b2, ((0, 0), (0, ph)))                                 # (1, Hp)
    w3p = jnp.pad(w3, ((0, ph), (0, 0))).astype(jnp.bfloat16)            # (Hp, dim)
    b3p = b3                                                             # (1, dim)
    return tuple(jax.block_until_ready(p) for p in
                 (w1x, w1n, b1p, w2p, b2p, w3p, b3p))


def edm_denoiser(x, sigma, prepared_params, *, batch_tile=1024):
    """x: (B, dim) f32 or bf16, sigma: (B, 1) f32 (>0),
    prepared_params: output of prepare_params()."""
    B, dim = x.shape
    w1x, w1n, b1, w2, b2, w3, b3 = prepared_params
    Hp = w2.shape[0]
    assert w1x.shape[0] == dim, "prepared_params do not match x's feature dim"

    # --- batch tiling (sublane-aligned; >=2 tiles when possible for v7x 2 TCs) ---
    batch_tile = max(_round_up(int(batch_tile), 8), 8)
    TB = min(batch_tile, _round_up(B, 8))
    if _round_up(B, TB) // TB < 2 and TB >= 16:
        TB = _round_up(pl.cdiv(TB, 2), 8)
    Bp = _round_up(B, TB)
    grid = (Bp // TB,)

    if Bp != B:
        x_in = jnp.pad(x, ((0, Bp - B), (0, 0)))
        # pad sigma rows with 1.0 so log(sigma) stays finite in dead rows
        sig_in = jnp.pad(sigma, ((0, Bp - B), (0, 0)), constant_values=1.0)
    else:
        x_in, sig_in = x, sigma

    batch_map = lambda i: (i, 0)
    resident_map = lambda i: (0, 0)     # constant block -> stays in VMEM

    # Cap the VMEM request per generation (~5/8 of physical: ~40 MiB on v7x).
    try:
        vmem_cap = int(pltpu.get_tpu_info().vmem_capacity_bytes) * 5 // 8
    except Exception:
        vmem_cap = 40 << 20

    x_bytes = jnp.dtype(x.dtype).itemsize

    def build(single_buffer_weights):
        res_kw = ({"pipeline_mode": pl.Buffered(1)} if single_buffer_weights
                  else {})
        in_specs = [
            pl.BlockSpec((TB, dim), batch_map),             # x tile
            pl.BlockSpec((TB, 1), batch_map),               # sigma tile
            pl.BlockSpec((dim, Hp), resident_map, **res_kw),  # w1x
            pl.BlockSpec((1, Hp), resident_map, **res_kw),    # w1n
            pl.BlockSpec((1, Hp), resident_map, **res_kw),    # b1
            pl.BlockSpec((Hp, Hp), resident_map, **res_kw),   # w2
            pl.BlockSpec((1, Hp), resident_map, **res_kw),    # b2
            pl.BlockSpec((Hp, dim), resident_map, **res_kw),  # w3
            pl.BlockSpec((1, dim), resident_map, **res_kw),   # b3
        ]
        out_spec = pl.BlockSpec((TB, dim), batch_map)

        # Exact VMEM accounting: weights x1 (or x2 if double-buffered),
        # in/out x2 (pipeline double-buffers the batch tiles), activations x1,
        # plus margin for Mosaic internal scratch.
        w_mult = 1 if single_buffer_weights else 2
        weight_bytes = w_mult * (
            (w1x.size + w2.size + w3.size) * 2
            + (w1n.size + b1.size + b2.size + b3.size) * 4)
        io_bytes = 2 * (TB * dim * x_bytes + TB * 4 + TB * dim * x_bytes)
        act_bytes = 3 * TB * Hp * 4 + 2 * TB * dim * 4
        vmem_bytes = int(min(max(weight_bytes + io_bytes + act_bytes + (4 << 20),
                                 16 << 20),
                             vmem_cap))

        return pl.pallas_call(
            edm_denoiser_kernel,
            out_shape=jax.ShapeDtypeStruct((Bp, dim), x.dtype),
            grid=grid,
            in_specs=in_specs,
            out_specs=out_spec,
            compiler_params=pltpu.CompilerParams(
                dimension_semantics=("parallel",),
                vmem_limit_bytes=vmem_bytes,
            ),
        )

    args = (x_in, sig_in, w1x, w1n, b1, w2, b2, w3, b3)
    try:
        out = build(True)(*args)
    except Exception:
        # pipeline_mode=pl.Buffered(1) unsupported on this jax/libtpu: fall back
        # to default double-buffered resident weights (budget adjusted above).
        out = build(False)(*args)

    return out[:B, :] if Bp != B else out


def edm_denoiser_reference(x, sigma, raw_params):
    """Pure-JAX f32 reference of the same forward, for a sanity check."""
    w1, b1, w2, b2, w3, b3 = raw_params
    sd2 = SIGMA_DATA ** 2
    c_skip = sd2 / (sigma ** 2 + sd2)
    c_out = sigma * SIGMA_DATA / jnp.sqrt(sigma ** 2 + sd2)
    c_in = 1.0 / jnp.sqrt(sd2 + sigma ** 2)
    c_noise = jnp.log(sigma) / 4.0
    h = jnp.concatenate([c_in * x, c_noise], axis=-1)
    h = h @ w1 + b1
    h = h * jax.nn.sigmoid(h)
    h = h @ w2 + b2
    h = h * jax.nn.sigmoid(h)
    f_x = h @ w3 + b3
    return c_skip * x + c_out * f_x


if __name__ == "__main__":
    key = jax.random.PRNGKey(0)
    k_x, k_sigma, k_params = jax.random.split(key, 3)

    B, DIM, HIDDEN = 8, 16, 32          # small shapes consistent with the MLP denoiser
    x = jax.random.normal(k_x, (B, DIM), jnp.float32)
    # sigma > 0 (log-normal style noise levels), broadcast shape (B, 1)
    sigma = jnp.exp(jax.random.normal(k_sigma, (B, 1), jnp.float32) * 1.2 - 1.2)

    raw_params = init_mlp_params(k_params, DIM, HIDDEN)
    params = prepare_params(raw_params)   # one-time pad + bf16 cast (hoisted)

    d_x = edm_denoiser(x, sigma, params)
    d_x = jax.block_until_ready(d_x)

    ref = edm_denoiser_reference(x, sigma, raw_params)
    assert d_x.shape == (B, DIM)
    # bf16 MXU operands + approx reciprocal vs f32 reference -> loosened tolerance
    assert jnp.allclose(d_x, ref, atol=5e-2, rtol=5e-2), \
        float(jnp.max(jnp.abs(d_x - ref)))

    print("KERNEL_OK")
</pallas_src>

<mosaic_0001>
module attributes {stable_mosaic.version = 11 : i64} {
  func.func @edm_denoiser_kernel(%arg0: i32, %arg1: memref<8x16xf32, #tpu.memory_space<vmem>>, %arg2: memref<8x1xf32, #tpu.memory_space<vmem>>, %arg3: memref<16x128xbf16, #tpu.memory_space<vmem>>, %arg4: memref<1x128xf32, #tpu.memory_space<vmem>>, %arg5: memref<1x128xf32, #tpu.memory_space<vmem>>, %arg6: memref<128x128xbf16, #tpu.memory_space<vmem>>, %arg7: memref<1x128xf32, #tpu.memory_space<vmem>>, %arg8: memref<128x16xbf16, #tpu.memory_space<vmem>>, %arg9: memref<1x16xf32, #tpu.memory_space<vmem>>, %arg10: memref<8x16xf32, #tpu.memory_space<vmem>>) attributes {dimension_semantics = [#tpu.dimension_semantics<parallel>], iteration_bounds = array<i64: 1>, scalar_prefetch = 0 : i64, scratch_operands = 0 : i64, tpu.core_type = #tpu.core_type<tc>, window_params = [{transform_indices = @transform_0, window_bounds = array<i64: 8, 16>}, {transform_indices = @transform_1, window_bounds = array<i64: 8, 1>}, {pipeline_mode = #tpu.pipeline_mode<synchronous>, transform_indices = @transform_2, window_bounds = array<i64: 16, 128>}, {pipeline_mode = #tpu.pipeline_mode<synchronous>, transform_indices = @transform_3, window_bounds = array<i64: 1, 128>}, {pipeline_mode = #tpu.pipeline_mode<synchronous>, transform_indices = @transform_4, window_bounds = array<i64: 1, 128>}, {pipeline_mode = #tpu.pipeline_mode<synchronous>, transform_indices = @transform_5, window_bounds = array<i64: 128, 128>}, {pipeline_mode = #tpu.pipeline_mode<synchronous>, transform_indices = @transform_6, window_bounds = array<i64: 1, 128>}, {pipeline_mode = #tpu.pipeline_mode<synchronous>, transform_indices = @transform_7, window_bounds = array<i64: 128, 16>}, {pipeline_mode = #tpu.pipeline_mode<synchronous>, transform_indices = @transform_8, window_bounds = array<i64: 1, 16>}, {transform_indices = @transform_9, window_bounds = array<i64: 8, 16>}]} {
    %c0 = arith.constant 0 : index
    %c0_0 = arith.constant 0 : index
    %0 = vector.load %arg1[%c0, %c0_0] : memref<8x16xf32, #tpu.memory_space<vmem>>, vector<8x16xf32>
    %c0_1 = arith.constant 0 : index
    %c0_2 = arith.constant 0 : index
    %1 = vector.load %arg2[%c0_1, %c0_2] : memref<8x1xf32, #tpu.memory_space<vmem>>, vector<8x1xf32>
    %cst = arith.constant 5.000000e-01 : f32
    %cst_3 = arith.constant 5.000000e-01 : f32
    %2 = arith.mulf %cst, %cst_3 : f32
    %3 = arith.mulf %1, %1 : vector<8x1xf32>
    %4 = vector.broadcast %2 : f32 to vector<8x1xf32>
    %5 = arith.addf %3, %4 : vector<8x1xf32>
    %6 = math.rsqrt %5 : vector<8x1xf32>
    %7 = vector.broadcast %2 : f32 to vector<8x1xf32>
    %8 = arith.mulf %7, %6 : vector<8x1xf32>
    %9 = arith.mulf %8, %6 : vector<8x1xf32>
    %cst_4 = arith.constant 5.000000e-01 : f32
    %10 = vector.broadcast %cst_4 : f32 to vector<8x1xf32>
    %11 = arith.mulf %1, %10 : vector<8x1xf32>
    %12 = arith.mulf %11, %6 : vector<8x1xf32>
    %13 = math.log %1 : vector<8x1xf32>
    %cst_5 = arith.constant 2.500000e-01 : f32
    %14 = vector.broadcast %cst_5 : f32 to vector<8x1xf32>
    %15 = arith.mulf %13, %14 : vector<8x1xf32>
    %16 = vector.broadcast %6 : vector<8x1xf32> to vector<8x16xf32>
    %17 = arith.mulf %16, %0 : vector<8x16xf32>
    %18 = arith.truncf %17 : vector<8x16xf32> to vector<8x16xbf16>
    %c0_6 = arith.constant 0 : index
    %c0_7 = arith.constant 0 : index
    %19 = vector.load %arg3[%c0_6, %c0_7] : memref<16x128xbf16, #tpu.memory_space<vmem>>, vector<16x128xbf16>
    %cst_8 = arith.constant dense<0.000000e+00> : vector<8x128xf32>
    %20 = tpu.matmul %18, %19, %cst_8 {dimension_numbers = #tpu.dot_dimension_numbers<[1], [0], [0], [1], [0, 0, 1, 1], [], []>} : vector<8x16xbf16>, vector<16x128xbf16>, vector<8x128xf32> -> vector<8x128xf32>
    %c0_9 = arith.constant 0 : index
    %c0_10 = arith.constant 0 : index
    %21 = vector.load %arg4[%c0_9, %c0_10] : memref<1x128xf32, #tpu.memory_space<vmem>>, vector<1x128xf32>
    %22 = vector.broadcast %15 : vector<8x1xf32> to vector<8x128xf32>
    %23 = vector.broadcast %21 : vector<1x128xf32> to vector<8x128xf32>
    %24 = arith.mulf %22, %23 : vector<8x128xf32>
    %c0_11 = arith.constant 0 : index
    %c0_12 = arith.constant 0 : index
    %25 = vector.load %arg5[%c0_11, %c0_12] : memref<1x128xf32, #tpu.memory_space<vmem>>, vector<1x128xf32>
    %26 = vector.broadcast %25 : vector<1x128xf32> to vector<8x128xf32>
    %27 = arith.addf %24, %26 : vector<8x128xf32>
    %28 = arith.addf %20, %27 : vector<8x128xf32>
    %cst_13 = arith.constant 0.000000e+00 : f32
    %29 = vector.broadcast %cst_13 : f32 to vector<8x128xf32>
    %30 = arith.subf %29, %28 : vector<8x128xf32>
    %31 = math.exp %30 : vector<8x128xf32>
    %cst_14 = arith.constant 1.000000e+00 : f32
    %32 = vector.broadcast %cst_14 : f32 to vector<8x128xf32>
    %33 = arith.addf %32, %31 : vector<8x128xf32>
    %34 = tpu.reciprocal %33 {approx = true} : vector<8x128xf32> -> vector<8x128xf32>
    %35 = arith.mulf %28, %34 : vector<8x128xf32>
    %36 = arith.truncf %35 : vector<8x128xf32> to vector<8x128xbf16>
    %c0_15 = arith.constant 0 : index
    %c0_16 = arith.constant 0 : index
    %37 = vector.load %arg6[%c0_15, %c0_16] : memref<128x128xbf16, #tpu.memory_space<vmem>>, vector<128x128xbf16>
    %cst_17 = arith.constant dense<0.000000e+00> : vector<8x128xf32>
    %38 = tpu.matmul %36, %37, %cst_17 {dimension_numbers = #tpu.dot_dimension_numbers<[1], [0], [0], [1], [0, 0, 1, 1], [], []>} : vector<8x128xbf16>, vector<128x128xbf16>, vector<8x128xf32> -> vector<8x128xf32>
    %c0_18 = arith.constant 0 : index
    %c0_19 = arith.constant 0 : index
    %39 = vector.load %arg7[%c0_18, %c0_19] : memref<1x128xf32, #tpu.memory_space<vmem>>, vector<1x128xf32>
    %40 = vector.broadcast %39 : vector<1x128xf32> to vector<8x128xf32>
    %41 = arith.addf %38, %40 : vector<8x128xf32>
    %cst_20 = arith.constant 0.000000e+00 : f32
    %42 = vector.broadcast %cst_20 : f32 to vector<8x128xf32>
    %43 = arith.subf %42, %41 : vector<8x128xf32>
    %44 = math.exp %43 : vector<8x128xf32>
    %cst_21 = arith.constant 1.000000e+00 : f32
    %45 = vector.broadcast %cst_21 : f32 to vector<8x128xf32>
    %46 = arith.addf %45, %44 : vector<8x128xf32>
    %47 = tpu.reciprocal %46 {approx = true} : vector<8x128xf32> -> vector<8x128xf32>
    %48 = arith.mulf %41, %47 : vector<8x128xf32>
    %49 = arith.truncf %48 : vector<8x128xf32> to vector<8x128xbf16>
    %c0_22 = arith.constant 0 : index
    %c0_23 = arith.constant 0 : index
    %50 = vector.load %arg8[%c0_22, %c0_23] : memref<128x16xbf16, #tpu.memory_space<vmem>>, vector<128x16xbf16>
    %cst_24 = arith.constant dense<0.000000e+00> : vector<8x16xf32>
    %51 = tpu.matmul %49, %50, %cst_24 {dimension_numbers = #tpu.dot_dimension_numbers<[1], [0], [0], [1], [0, 0, 1, 1], [], []>} : vector<8x128xbf16>, vector<128x16xbf16>, vector<8x16xf32> -> vector<8x16xf32>
    %c0_25 = arith.constant 0 : index
    %c0_26 = arith.constant 0 : index
    %52 = vector.load %arg9[%c0_25, %c0_26] : memref<1x16xf32, #tpu.memory_space<vmem>>, vector<1x16xf32>
    %53 = vector.broadcast %52 : vector<1x16xf32> to vector<8x16xf32>
    %54 = arith.addf %51, %53 : vector<8x16xf32>
    %55 = vector.broadcast %9 : vector<8x1xf32> to vector<8x16xf32>
    %56 = arith.mulf %55, %0 : vector<8x16xf32>
    %57 = vector.broadcast %12 : vector<8x1xf32> to vector<8x16xf32>
    %58 = arith.mulf %57, %54 : vector<8x16xf32>
    %59 = arith.addf %56, %58 : vector<8x16xf32>
    %c0_27 = arith.constant 0 : index
    %c0_28 = arith.constant 0 : index
    %60 = vector.load %arg10[%c0_27, %c0_28] : memref<8x16xf32, #tpu.memory_space<vmem>>, vector<8x16xf32>
    tpu.vector_store %arg10[%c0_27, %c0_28], %59 {strides = array<i32>} : memref<8x16xf32, #tpu.memory_space<vmem>>, vector<8x16xf32>,
    return
  }
  func.func @transform_0(%arg0: i32) -> (i32, i32) {
    %c0_i32 = arith.constant 0 : i32
    %c0_i32_0 = arith.constant 0 : i32
    return %arg0, %c0_i32 : i32, i32
  }
  func.func @transform_1(%arg0: i32) -> (i32, i32) {
    %c0_i32 = arith.constant 0 : i32
    %c0_i32_0 = arith.constant 0 : i32
    return %arg0, %c0_i32 : i32, i32
  }
  func.func @transform_2(%arg0: i32) -> (i32, i32) {
    %c0_i32 = arith.constant 0 : i32
    %c0_i32_0 = arith.constant 0 : i32
    %c0_i32_1 = arith.constant 0 : i32
    return %c0_i32, %c0_i32_0 : i32, i32
  }
  func.func @transform_3(%arg0: i32) -> (i32, i32) {
    %c0_i32 = arith.constant 0 : i32
    %c0_i32_0 = arith.constant 0 : i32
    %c0_i32_1 = arith.constant 0 : i32
    return %c0_i32, %c0_i32_0 : i32, i32
  }
  func.func @transform_4(%arg0: i32) -> (i32, i32) {
    %c0_i32 = arith.constant 0 : i32
    %c0_i32_0 = arith.constant 0 : i32
    %c0_i32_1 = arith.constant 0 : i32
    return %c0_i32, %c0_i32_0 : i32, i32
  }
  func.func @transform_5(%arg0: i32) -> (i32, i32) {
    %c0_i32 = arith.constant 0 : i32
    %c0_i32_0 = arith.constant 0 : i32
    %c0_i32_1 = arith.constant 0 : i32
    return %c0_i32, %c0_i32_0 : i32, i32
  }
  func.func @transform_6(%arg0: i32) -> (i32, i32) {
    %c0_i32 = arith.constant 0 : i32
    %c0_i32_0 = arith.constant 0 : i32
    %c0_i32_1 = arith.constant 0 : i32
    return %c0_i32, %c0_i32_0 : i32, i32
  }
  func.func @transform_7(%arg0: i32) -> (i32, i32) {
    %c0_i32 = arith.constant 0 : i32
    %c0_i32_0 = arith.constant 0 : i32
    %c0_i32_1 = arith.constant 0 : i32
    return %c0_i32, %c0_i32_0 : i32, i32
  }
  func.func @transform_8(%arg0: i32) -> (i32, i32) {
    %c0_i32 = arith.constant 0 : i32
    %c0_i32_0 = arith.constant 0 : i32
    %c0_i32_1 = arith.constant 0 : i32
    return %c0_i32, %c0_i32_0 : i32, i32
  }
  func.func @transform_9(%arg0: i32) -> (i32, i32) {
    %c0_i32 = arith.constant 0 : i32
    %c0_i32_0 = arith.constant 0 : i32
    return %arg0, %c0_i32 : i32, i32
  }
}

module attributes {stable_mosaic.version = 11 : i64} {
  func.func @edm_denoiser_kernel(%arg0: i32, %arg1: memref<8x16xf32, #tpu.memory_space<vmem>>, %arg2: memref<8x1xf32, #tpu.memory_space<vmem>>, %arg3: memref<16x128xbf16, #tpu.memory_space<vmem>>, %arg4: memref<1x128xf32, #tpu.memory_space<vmem>>, %arg5: memref<1x128xf32, #tpu.memory_space<vmem>>, %arg6: memref<128x128xbf16, #tpu.memory_space<vmem>>, %arg7: memref<1x128xf32, #tpu.memory_space<vmem>>, %arg8: memref<128x16xbf16, #tpu.memory_space<vmem>>, %arg9: memref<1x16xf32, #tpu.memory_space<vmem>>, %arg10: memref<8x16xf32, #tpu.memory_space<vmem>>) attributes {dimension_semantics = [#tpu.dimension_semantics<parallel>], iteration_bounds = array<i64: 1>, scalar_prefetch = 0 : i64, scratch_operands = 0 : i64, tpu.core_type = #tpu.core_type<tc>, window_params = [{transform_indices = @transform_0, window_bounds = array<i64: 8, 16>}, {transform_indices = @transform_1, window_bounds = array<i64: 8, 1>}, {pipeline_mode = #tpu.pipeline_mode<synchronous>, transform_indices = @transform_2, window_bounds = array<i64: 16, 128>}, {pipeline_mode = #tpu.pipeline_mode<synchronous>, transform_indices = @transform_3, window_bounds = array<i64: 1, 128>}, {pipeline_mode = #tpu.pipeline_mode<synchronous>, transform_indices = @transform_4, window_bounds = array<i64: 1, 128>}, {pipeline_mode = #tpu.pipeline_mode<synchronous>, transform_indices = @transform_5, window_bounds = array<i64: 128, 128>}, {pipeline_mode = #tpu.pipeline_mode<synchronous>, transform_indices = @transform_6, window_bounds = array<i64: 1, 128>}, {pipeline_mode = #tpu.pipeline_mode<synchronous>, transform_indices = @transform_7, window_bounds = array<i64: 128, 16>}, {pipeline_mode = #tpu.pipeline_mode<synchronous>, transform_indices = @transform_8, window_bounds = array<i64: 1, 16>}, {transform_indices = @transform_9, window_bounds = array<i64: 8, 16>}]} {
    %c0 = arith.constant 0 : index
    %c0_0 = arith.constant 0 : index
    %0 = vector.load %arg1[%c0, %c0_0] : memref<8x16xf32, #tpu.memory_space<vmem>>, vector<8x16xf32>
    %c0_1 = arith.constant 0 : index
    %c0_2 = arith.constant 0 : index
    %1 = vector.load %arg2[%c0_1, %c0_2] : memref<8x1xf32, #tpu.memory_space<vmem>>, vector<8x1xf32>
    %cst = arith.constant 5.000000e-01 : f32
    %cst_3 = arith.constant 5.000000e-01 : f32
    %2 = arith.mulf %cst, %cst_3 : f32
    %3 = arith.mulf %1, %1 : vector<8x1xf32>
    %4 = vector.broadcast %2 : f32 to vector<8x1xf32>
    %5 = arith.addf %3, %4 : vector<8x1xf32>
    %6 = math.rsqrt %5 : vector<8x1xf32>
    %7 = vector.broadcast %2 : f32 to vector<8x1xf32>
    %8 = arith.mulf %7, %6 : vector<8x1xf32>
    %9 = arith.mulf %8, %6 : vector<8x1xf32>
    %cst_4 = arith.constant 5.000000e-01 : f32
    %10 = vector.broadcast %cst_4 : f32 to vector<8x1xf32>
    %11 = arith.mulf %1, %10 : vector<8x1xf32>
    %12 = arith.mulf %11, %6 : vector<8x1xf32>
    %13 = math.log %1 : vector<8x1xf32>
    %cst_5 = arith.constant 2.500000e-01 : f32
    %14 = vector.broadcast %cst_5 : f32 to vector<8x1xf32>
    %15 = arith.mulf %13, %14 : vector<8x1xf32>
    %16 = vector.broadcast %6 : vector<8x1xf32> to vector<8x16xf32>
    %17 = arith.mulf %16, %0 : vector<8x16xf32>
    %18 = arith.truncf %17 : vector<8x16xf32> to vector<8x16xbf16>
    %c0_6 = arith.constant 0 : index
    %c0_7 = arith.constant 0 : index
    %19 = vector.load %arg3[%c0_6, %c0_7] : memref<16x128xbf16, #tpu.memory_space<vmem>>, vector<16x128xbf16>
    %cst_8 = arith.constant dense<0.000000e+00> : vector<8x128xf32>
    %20 = tpu.matmul %18, %19, %cst_8 {dimension_numbers = #tpu.dot_dimension_numbers<[1], [0], [0], [1], [0, 0, 1, 1], [], []>} : vector<8x16xbf16>, vector<16x128xbf16>, vector<8x128xf32> -> vector<8x128xf32>
    %c0_9 = arith.constant 0 : index
    %c0_10 = arith.constant 0 : index
    %21 = vector.load %arg4[%c0_9, %c0_10] : memref<1x128xf32, #tpu.memory_space<vmem>>, vector<1x128xf32>
    %22 = vector.broadcast %15 : vector<8x1xf32> to vector<8x128xf32>
    %23 = vector.broadcast %21 : vector<1x128xf32> to vector<8x128xf32>
    %24 = arith.mulf %22, %23 : vector<8x128xf32>
    %c0_11 = arith.constant 0 : index
    %c0_12 = arith.constant 0 : index
    %25 = vector.load %arg5[%c0_11, %c0_12] : memref<1x128xf32, #tpu.memory_space<vmem>>, vector<1x128xf32>
    %26 = vector.broadcast %25 : vector<1x128xf32> to vector<8x128xf32>
    %27 = arith.addf %24, %26 : vector<8x128xf32>
    %28 = arith.addf %20, %27 : vector<8x128xf32>
    %cst_13 = arith.constant 0.000000e+00 : f32
    %29 = vector.broadcast %cst_13 : f32 to vector<8x128xf32>
    %30 = arith.subf %29, %28 : vector<8x128xf32>
    %31 = math.exp %30 : vector<8x128xf32>
    %cst_14 = arith.constant 1.000000e+00 : f32
    %32 = vector.broadcast %cst_14 : f32 to vector<8x128xf32>
    %33 = arith.addf %32, %31 : vector<8x128xf32>
    %34 = tpu.reciprocal %33 {approx = true} : vector<8x128xf32> -> vector<8x128xf32>
    %35 = arith.mulf %28, %34 : vector<8x128xf32>
    %36 = arith.truncf %35 : vector<8x128xf32> to vector<8x128xbf16>
    %c0_15 = arith.constant 0 : index
    %c0_16 = arith.constant 0 : index
    %37 = vector.load %arg6[%c0_15, %c0_16] : memref<128x128xbf16, #tpu.memory_space<vmem>>, vector<128x128xbf16>
    %cst_17 = arith.constant dense<0.000000e+00> : vector<8x128xf32>
    %38 = tpu.matmul %36, %37, %cst_17 {dimension_numbers = #tpu.dot_dimension_numbers<[1], [0], [0], [1], [0, 0, 1, 1], [], []>} : vector<8x128xbf16>, vector<128x128xbf16>, vector<8x128xf32> -> vector<8x128xf32>
    %c0_18 = arith.constant 0 : index
    %c0_19 = arith.constant 0 : index
    %39 = vector.load %arg7[%c0_18, %c0_19] : memref<1x128xf32, #tpu.memory_space<vmem>>, vector<1x128xf32>
    %40 = vector.broadcast %39 : vector<1x128xf32> to vector<8x128xf32>
    %41 = arith.addf %38, %40 : vector<8x128xf32>
    %cst_20 = arith.constant 0.000000e+00 : f32
    %42 = vector.broadcast %cst_20 : f32 to vector<8x128xf32>
    %43 = arith.subf %42, %41 : vector<8x128xf32>
    %44 = math.exp %43 : vector<8x128xf32>
    %cst_21 = arith.constant 1.000000e+00 : f32
    %45 = vector.broadcast %cst_21 : f32 to vector<8x128xf32>
    %46 = arith.addf %45, %44 : vector<8x128xf32>
    %47 = tpu.reciprocal %46 {approx = true} : vector<8x128xf32> -> vector<8x128xf32>
    %48 = arith.mulf %41, %47 : vector<8x128xf32>
    %49 = arith.truncf %48 : vector<8x128xf32> to vector<8x128xbf16>
    %c0_22 = arith.constant 0 : index
    %c0_23 = arith.constant 0 : index
    %50 = vector.load %arg8[%c0_22, %c0_23] : memref<128x16xbf16, #tpu.memory_space<vmem>>, vector<128x16xbf16>
    %cst_24 = arith.constant dense<0.000000e+00> : vector<8x16xf32>
    %51 = tpu.matmul %49, %50, %cst_24 {dimension_numbers = #tpu.dot_dimension_numbers<[1], [0], [0], [1], [0, 0, 1, 1], [], []>} : vector<8x128xbf16>, vector<128x16xbf16>, vector<8x16xf32> -> vector<8x16xf32>
    %c0_25 = arith.constant 0 : index
    %c0_26 = arith.constant 0 : index
    %52 = vector.load %arg9[%c0_25, %c0_26] : memref<1x16xf32, #tpu.memory_space<vmem>>, vector<1x16xf32>
    %53 = vector.broadcast %52 : vector<1x16xf32> to vector<8x16xf32>
    %54 = arith.addf %51, %53 : vector<8x16xf32>
    %55 = vector.broadcast %9 : vector<8x1xf32> to vector<8x16xf32>
    %56 = arith.mulf %55, %0 : vector<8x16xf32>
    %57 = vector.broadcast %12 : vector<8x1xf32> to vector<8x16xf32>
    %58 = arith.mulf %57, %54 : vector<8x16xf32>
    %59 = arith.addf %56, %58 : vector<8x16xf32>
    %c0_27 = arith.constant 0 : index
    %c0_28 = arith.constant 0 : index
    %60 = vector.load %arg10[%c0_27, %c0_28] : memref<8x16xf32, #tpu.memory_space<vmem>>, vector<8x16xf32>
    tpu.vector_store %arg10[%c0_27, %c0_28], %59 {strides = array<i32>} : memref<8x16xf32, #tpu.memory_space<vmem>>, vector<8x16xf32>,
    return
  }
  func.func @transform_0(%arg0: i32) -> (i32, i32) {
    %c0_i32 = arith.constant 0 : i32
    %c0_i32_0 = arith.constant 0 : i32
    return %arg0, %c0_i32 : i32, i32
  }
  func.func @transform_1(%arg0: i32) -> (i32, i32) {
    %c0_i32 = arith.constant 0 : i32
    %c0_i32_0 = arith.constant 0 : i32
    return %arg0, %c0_i32 : i32, i32
  }
  func.func @transform_2(%arg0: i32) -> (i32, i32) {
    %c0_i32 = arith.constant 0 : i32
    %c0_i32_0 = arith.constant 0 : i32
    %c0_i32_1 = arith.constant 0 : i32
    return %c0_i32, %c0_i32_0 : i32, i32
  }
  func.func @transform_3(%arg0: i32) -> (i32, i32) {
    %c0_i32 = arith.constant 0 : i32
    %c0_i32_0 = arith.constant 0 : i32
    %c0_i32_1 = arith.constant 0 : i32
    return %c0_i32, %c0_i32_0 : i32, i32
  }
  func.func @transform_4(%arg0: i32) -> (i32, i32) {
    %c0_i32 = arith.constant 0 : i32
    %c0_i32_0 = arith.constant 0 : i32
    %c0_i32_1 = arith.constant 0 : i32
    return %c0_i32, %c0_i32_0 : i32, i32
  }
  func.func @transform_5(%arg0: i32) -> (i32, i32) {
    %c0_i32 = arith.constant 0 : i32
    %c0_i32_0 = arith.constant 0 : i32
    %c0_i32_1 = arith.constant 0 : i32
    return %c0_i32, %c0_i32_0 : i32, i32
  }
  func.func @transform_6(%arg0: i32) -> (i32, i32) {
    %c0_i32 = arith.constant 0 : i32
    %c0_i32_0 = arith.constant 0 : i32
    %c0_i32_1 = arith.constant 0 : i32
    return %c0_i32, %c0_i32_0 : i32, i32
  }
  func.func @transform_7(%arg0: i32) -> (i32, i32) {
    %c0_i32 = arith.constant 0 : i32
    %c0_i32_0 = arith.constant 0 : i32
    %c0_i32_1 = arith.constant 0 : i32
    return %c0_i32, %c0_i32_0 : i32, i32
  }
  func.func @transform_8(%arg0: i32) -> (i32, i32) {
    %c0_i32 = arith.constant 0 : i32
    %c0_i32_0 = arith.constant 0 : i32
    %c0_i32_1 = arith.constant 0 : i32
    return %c0_i32, %c0_i32_0 : i32, i32
  }
  func.func @transform_9(%arg0: i32) -> (i32, i32) {
    %c0_i32 = arith.constant 0 : i32
    %c0_i32_0 = arith.constant 0 : i32
    return %arg0, %c0_i32 : i32, i32
  }
}

</mosaic_0001>

<bundles_post_ra>
// kernel: tpu_custom_call.1
= control target key start
LH: loop header
LB: loop body
LE: loop exit
PB: predicated region body
PF: predicated region fallthrough
CT: control target
= control target key end

     0   :  { %14 = vsyncpa [#allocation3], 0  ;;  %s631_s0 = inlined_call_operand.vmem [shape: f32[8,16], index: 0, kind: input, shape index: {}]   ;;  %s632_s1 = inlined_call_operand.vmem [shape: f32[8,1], index: 1, kind: input, shape index: {}]   ;;  %s633_s2 = inlined_call_operand.hbm [shape: bf16[16,128], index: 2, kind: input, shape index: {}]   ;;  %s634_s3 = inlined_call_operand.vmem [shape: f32[1,128], index: 3, kind: input, shape index: {}]   ;;  %s635_s4 = inlined_call_operand.vmem [shape: f32[1,128], index: 4, kind: input, shape index: {}]   ;;  %s636_s5 = inlined_call_operand.vmem [shape: bf16[128,128], index: 5, kind: input, shape index: {}]   ;;  %s637_s6 = inlined_call_operand.vmem [shape: f32[1,128], index: 6, kind: input, shape index: {}]   ;;  %s638_s7 = inlined_call_operand.vmem [shape: bf16[128,16], index: 7, kind: input, shape index: {}]   ;;  %s639_s8 = inlined_call_operand.vmem [shape: f32[1,16], index: 8, kind: input, shape index: {}]   ;;  %s640_s9 = inlined_call_operand.hbm [shape: f32[8,16], index: 9, kind: output, shape index: {}]  }
   0x1   :  { %15 = vsyncpa [#allocation4], 0  ;;  %s24_s11 = sshll.u32 %s633_s2, 4  ;;  %s486_s12 = smov [#allocation2]   ;;  %s25_s11 = int_to_ptr.hbm [resolvable:$true] %s24_s11 }
   0x2   :  { %s26_s13 = sshll.u32 %s486_s12, 4  ;;  %s487_s14 = smov 64   ;;  %s27_s13 = int_to_ptr.vmem [resolvable:$true] %s26_s13 }
   0x3   :  { %s488_s15 = smov 4  }
   0x4   :  { %32 = dma.hbm_to_vmem [thread:$0]  %s25_s11, 128, %s27_s13, [#allocation3], %s487_s14, %s487_s14, %s488_s15  }
   0x5   :  { %482 = dma.done.wait [#allocation3], 128  }
   0x6   :  { %483 = vsyncadd [#allocation3], 4294967168  ;;  %v489_v0 = vmov 0   ;;  %v547_v1 = vld [vmem:[%s632_s1] sm:$0xff]  ;;  %v402_v15 = vld [vmem:[%s636_s5 + $0x38] sm:$0xff]  ;;  %vm101_vm3 = vcmask 130048  }
   0x7   :  { %416 = vset.pattern.permute.xlu0 %v489_v0  ;;  %417 = vset.pattern.permute.xlu1 %v489_v0  ;;  %v52_v2 = vmul.f32 %v547_v1, %v547_v1  ;;  %v394_v14 = vld [vmem:[#allocation2] sm:$0xff]  ;;  %v401_v20 = vld [vmem:[%s636_s5 + $0x30] sm:$0xff]  ;;  %v400_v21 = vld [vmem:[%s636_s5 + $0x28] sm:$0xff]  ;;  %v66_v53 = vmul.f32 0.5, %v547_v1  ;;  %s490_s28 = smov [#allocation5]   ;;  %s315_s11 = sshll.u32 %s640_s9, 4  ;;  %s316_s11 = int_to_ptr.hbm [resolvable:$true] %s315_s11 }
   0x8   :  { %112 = vmatpush.bf16.msra.mxu0 %v394_v14  ;;  %193 = vmatpush.bf16.msra.mxu1 %v402_v15  ;;  %v561_v16 = vld [vmem:[%s631_s0] sm:$0xff]  ;;  %v398_v23 = vld [vmem:[%s636_s5 + $0x18] sm:$0xff]  ;;  %v397_v24 = vld [vmem:[%s636_s5 + $0x10] sm:$0xff]  ;;  %s313_s29 = sshll.u32 %s490_s28, 4  ;;  %s314_s29 = int_to_ptr.vmem [resolvable:$true] %s313_s29 }
   0x9   :  { %v53_v3 = vadd.f32 0.25, %v52_v2  ;;  %v399_v22 = vld [vmem:[%s636_s5 + $0x20] sm:$0xff]  ;;  %v396_v25 = vld [vmem:[%s636_s5 + $0x8] sm:$0xff]  ;;  %v410_v31 = vld [vmem:[%s638_s7 + $0x38] sm:$0xff] }
   0xa   :  { %v395_v26 = vld [vmem:[%s636_s5] sm:$0xff]  ;;  %281 = vmatpush.bf16.msra.mxu2 %v410_v31  ;;  %v409_v43 = vld [vmem:[%s638_s7 + $0x30] sm:$0xff]  ;;  %v408_v44 = vld [vmem:[%s638_s7 + $0x28] sm:$0xff] }
   0xb   :  { %422 = vrsqrt.f32 %v53_v3  ;;  %vm60_vm0 = vweird.f32 %v53_v3  ;;  %v418_v27 = vld [vmem:[%s634_s3] ss:$0 sm:$0xff]  ;;  %v406_v46 = vld [vmem:[%s638_s7 + $0x18] sm:$0xff]  ;;  %v405_v47 = vld [vmem:[%s638_s7 + $0x10] sm:$0xff] }
   0xc   :  { %424 = vlog2.f32 %v547_v1  ;;  %194 = vmatpush.bf16.msra.mxu1 %v401_v20  ;;  %v419_v30 = vld [vmem:[%s635_s4] ss:$0 sm:$0xff]  ;;  %v404_v48 = vld [vmem:[%s638_s7 + $0x8] sm:$0xff] }
   0xd   :  { %v407_v45 = vld [vmem:[%s638_s7 + $0x20] sm:$0xff] }
   0xe   :  { %282 = vmatpush.bf16.msra.mxu2 %v409_v43  ;;  %v403_v49 = vld [vmem:[%s638_s7] sm:$0xff] }
   0xf   :  { %v420_v52 = vld [vmem:[%s637_s6] ss:$0 sm:$0xff] }
  0x10   :  { %195 = vmatpush.bf16.msra.mxu1 %v400_v21  ;;  %v421_v1 = vld [vmem:[%s639_s8] ss:$0 sm:$0xff] }
  0x11   :  { %v423_v4 = vpop.eup %422 }
  0x12   :  { %v55_v5 = vmul.f32 %v423_v4, %v53_v3  ;;  %vm61_vm1 = vweird.f32 %v423_v4  ;;  %v425_v9 = vpop.eup %424  ;;  %283 = vmatpush.bf16.msra.mxu2 %v408_v44 }
  0x13   :  { %vm62_vm2 = vmor %vm60_vm0, %vm61_vm1  ;;  %v69_v12 = vmul.f32 0.6931472, %v425_v9 }
  0x14   :  { %v56_v6 = vmul.f32 %v423_v4, %v55_v5  ;;  %196 = vmatpush.bf16.msra.mxu1 %v399_v22 }
  0x15   :  { %v70_v13 = vmul.f32 0.25, %v69_v12 }
  0x16   :  { %v57_v7 = vmul.f32 0.5, %v56_v6  ;;  %284 = vmatpush.bf16.msra.mxu2 %v407_v45 }
  0x18   :  { %v58_v8 = vsub.f32 1.5, %v57_v7  ;;  %197 = vmatpush.bf16.msra.mxu1 %v398_v23 }
  0x1a   :  { %v59_v10 = vmul.f32 %v423_v4, %v58_v8  ;;  %285 = vmatpush.bf16.msra.mxu2 %v406_v46 }
  0x1c   :  { %v552_v11 = vsel %vm62_vm2, %v423_v4, %v59_v10  ;;  %198 = vmatpush.bf16.msra.mxu1 %v397_v24 }
  0x1d   :  { %73 = vperm.xlu0 %416, %v552_v11   ;;  %v64_v50 = vmul.f32 0.25, %v552_v11  ;;  %v67_v56 = vmul.f32 %v66_v53, %v552_v11 }
  0x1e   :  { %286 = vmatpush.bf16.msra.mxu2 %v405_v47 }
  0x1f   :  { %v65_v51 = vmul.f32 %v64_v50, %v552_v11 }
  0x20   :  { %199 = vmatpush.bf16.msra.mxu1 %v396_v25 }
  0x21   :  { %296 = vperm.xlu1 %417, %v65_v51  }
  0x22   :  { %287 = vmatpush.bf16.msra.mxu2 %v404_v48 }
  0x24   :  { %200 = vmatpush.bf16.msra.mxu1 %v395_v26 }
  0x25   :  { %83 = vperm.xlu0 %416, %v70_v13  }
  0x26   :  { %288 = vmatpush.bf16.msra.mxu2 %v403_v49 }
  0x29   :  { %302 = vperm.xlu1 %417, %v67_v56  }
  0x8f   :  { %v74_v17 = vpop.permute.xlu0 %73 }
  0x90   :  { %v76_v18 = vmul.f32 %v74_v17, %v561_v16 }
  0x92   :  { %v77_v19 = vpack.c.bf16 %v76_v18, %v76_v18 }
  0x93   :  { %v297_v2 = vpop.permute.xlu1 %296 }
  0x94   :  { %329 = vmatmul.msk.bf16.vlgmr.msra.gmra.mxu0 %vm101_vm3, %v77_v19  ;;  %v299_v6 = vmul.f32 %v297_v2, %v561_v16 }
  0x97   :  { %v84_v28 = vpop.permute.xlu0 %83 }
  0x98   :  { %v89_v29 = vmul.f32 %v418_v27, %v84_v28 }
  0x9a   :  { %v94_v32 = vadd.f32 %v419_v30, %v89_v29 }
  0x9b   :  { %v303_v5 = vpop.permute.xlu1 %302 }
 0x111   :  { %v114_v33 = vpop.f32.mrf.mxu0 }
 0x112   :  { %v115_v34 = vadd.f32 %v114_v33, %v94_v32 }
 0x114   :  { %v118_v35 = vsub.f32 0.0, %v115_v34 }
 0x116   :  { %v119_v36 = vmul.f32 1.442695, %v118_v35 }
 0x118   :  { %426 = vpow2.f32 %v119_v36 }
 0x119   :  { %v116_v37 = vpop.f32.mrf.mxu0 }
 0x11e   :  { %v427_v38 = vpop.eup %426 }
 0x11f   :  { %v121_v39 = vadd.f32 1.0, %v427_v38 }
 0x121   :  { %428 = vrcp.f32 %v121_v39 }
 0x127   :  { %v429_v40 = vpop.eup %428 }
 0x128   :  { %v123_v41 = vmul.f32 %v429_v40, %v115_v34 }
 0x12a   :  { %v124_v42 = vpack.c.bf16 %v123_v41, %v123_v41 }
 0x12c   :  { %201 = vmatmul.bf16.vlgmr.msra.gmra.mxu1 %v124_v42 }
 0x1a9   :  { %v202_v54 = vpop.f32.mrf.mxu1 }
 0x1aa   :  { %v203_v55 = vadd.f32 %v420_v52, %v202_v54 }
 0x1ac   :  { %v206_v57 = vsub.f32 0.0, %v203_v55 }
 0x1ae   :  { %v207_v58 = vmul.f32 1.442695, %v206_v57 }
 0x1b0   :  { %430 = vpow2.f32 %v207_v58 }
 0x1b1   :  { %v204_v59 = vpop.f32.mrf.mxu1 }
 0x1b6   :  { %v431_v60 = vpop.eup %430 }
 0x1b7   :  { %v209_v61 = vadd.f32 1.0, %v431_v60 }
 0x1b9   :  { %432 = vrcp.f32 %v209_v61 }
 0x1bf   :  { %v433_v62 = vpop.eup %432 }
 0x1c0   :  { %v211_v63 = vmul.f32 %v433_v62, %v203_v55 }
 0x1c2   :  { %v212_v0 = vpack.c.bf16 %v211_v63, %v211_v63 }
 0x1c4   :  { %289 = vmatmul.bf16.vlgmr.msra.gmra.mxu2 %v212_v0 }
 0x247   :  { %v290_v3 = vpop.f32.mrf.mxu2 }
 0x248   :  { %v291_v4 = vadd.f32 %v421_v1, %v290_v3 }
 0x24a   :  { %v305_v7 = vmul.f32 %v303_v5, %v291_v4 }
 0x24c   :  { %v306_v8 = vadd.f32 %v305_v7, %v299_v6 }
 0x24e   :  { %307 = vst.msk [vmem:[#allocation5] sm:$0xff] %vm101_vm3, %v306_v8 }
 0x24f   :  { %v292_v9 = vpop.f32.mrf.mxu2  ;;  %318 = dma.vmem_to_hbm [thread:$0]  %s314_s29, 128, %s316_s11, [#allocation4]  }
 0x250   :  { %484 = dma.done.wait [#allocation4], 128  }
 0x251   :  { %485 = vsyncadd [#allocation4], 4294967168 }
 0x252   :  { %323 = vsyncpa [#allocation3], 1 }
 0x253   :  { %324 = vsyncpa [#allocation4], 1 }

// kernel: tpu_custom_call.1
= control target key start
LH: loop header
LB: loop body
LE: loop exit
PB: predicated region body
PF: predicated region fallthrough
CT: control target
= control target key end

     0   :  { %14 = vsyncpa [#allocation3], 0  ;;  %s631_s0 = inlined_call_operand.vmem [shape: f32[8,16], index: 0, kind: input, shape index: {}]   ;;  %s632_s1 = inlined_call_operand.vmem [shape: f32[8,1], index: 1, kind: input, shape index: {}]   ;;  %s633_s2 = inlined_call_operand.hbm [shape: bf16[16,128], index: 2, kind: input, shape index: {}]   ;;  %s634_s3 = inlined_call_operand.vmem [shape: f32[1,128], index: 3, kind: input, shape index: {}]   ;;  %s635_s4 = inlined_call_operand.vmem [shape: f32[1,128], index: 4, kind: input, shape index: {}]   ;;  %s636_s5 = inlined_call_operand.vmem [shape: bf16[128,128], index: 5, kind: input, shape index: {}]   ;;  %s637_s6 = inlined_call_operand.vmem [shape: f32[1,128], index: 6, kind: input, shape index: {}]   ;;  %s638_s7 = inlined_call_operand.vmem [shape: bf16[128,16], index: 7, kind: input, shape index: {}]   ;;  %s639_s8 = inlined_call_operand.vmem [shape: f32[1,16], index: 8, kind: input, shape index: {}]   ;;  %s640_s9 = inlined_call_operand.hbm [shape: f32[8,16], index: 9, kind: output, shape index: {}]  }
   0x1   :  { %15 = vsyncpa [#allocation4], 0  ;;  %s24_s11 = sshll.u32 %s633_s2, 4  ;;  %s486_s12 = smov [#allocation2]   ;;  %s25_s11 = int_to_ptr.hbm [resolvable:$true] %s24_s11 }
   0x2   :  { %s26_s13 = sshll.u32 %s486_s12, 4  ;;  %s487_s14 = smov 64   ;;  %s27_s13 = int_to_ptr.vmem [resolvable:$true] %s26_s13 }
   0x3   :  { %s488_s15 = smov 4  }
   0x4   :  { %32 = dma.hbm_to_vmem [thread:$0]  %s25_s11, 128, %s27_s13, [#allocation3], %s487_s14, %s487_s14, %s488_s15  }
   0x5   :  { %482 = dma.done.wait [#allocation3], 128  }
   0x6   :  { %483 = vsyncadd [#allocation3], 4294967168  ;;  %v489_v0 = vmov 0   ;;  %v547_v1 = vld [vmem:[%s632_s1] sm:$0xff]  ;;  %v402_v15 = vld [vmem:[%s636_s5 + $0x38] sm:$0xff]  ;;  %vm101_vm3 = vcmask 130048  }
   0x7   :  { %416 = vset.pattern.permute.xlu0 %v489_v0  ;;  %417 = vset.pattern.permute.xlu1 %v489_v0  ;;  %v52_v2 = vmul.f32 %v547_v1, %v547_v1  ;;  %v394_v14 = vld [vmem:[#allocation2] sm:$0xff]  ;;  %v401_v20 = vld [vmem:[%s636_s5 + $0x30] sm:$0xff]  ;;  %v400_v21 = vld [vmem:[%s636_s5 + $0x28] sm:$0xff]  ;;  %v66_v53 = vmul.f32 0.5, %v547_v1  ;;  %s490_s28 = smov [#allocation5]   ;;  %s315_s11 = sshll.u32 %s640_s9, 4  ;;  %s316_s11 = int_to_ptr.hbm [resolvable:$true] %s315_s11 }
   0x8   :  { %112 = vmatpush.bf16.msra.mxu0 %v394_v14  ;;  %193 = vmatpush.bf16.msra.mxu1 %v402_v15  ;;  %v561_v16 = vld [vmem:[%s631_s0] sm:$0xff]  ;;  %v398_v23 = vld [vmem:[%s636_s5 + $0x18] sm:$0xff]  ;;  %v397_v24 = vld [vmem:[%s636_s5 + $0x10] sm:$0xff]  ;;  %s313_s29 = sshll.u32 %s490_s28, 4  ;;  %s314_s29 = int_to_ptr.vmem [resolvable:$true] %s313_s29 }
   0x9   :  { %v53_v3 = vadd.f32 0.25, %v52_v2  ;;  %v399_v22 = vld [vmem:[%s636_s5 + $0x20] sm:$0xff]  ;;  %v396_v25 = vld [vmem:[%s636_s5 + $0x8] sm:$0xff]  ;;  %v410_v31 = vld [vmem:[%s638_s7 + $0x38] sm:$0xff] }
   0xa   :  { %v395_v26 = vld [vmem:[%s636_s5] sm:$0xff]  ;;  %281 = vmatpush.bf16.msra.mxu2 %v410_v31  ;;  %v409_v43 = vld [vmem:[%s638_s7 + $0x30] sm:$0xff]  ;;  %v408_v44 = vld [vmem:[%s638_s7 + $0x28] sm:$0xff] }
   0xb   :  { %422 = vrsqrt.f32 %v53_v3  ;;  %vm60_vm0 = vweird.f32 %v53_v3  ;;  %v418_v27 = vld [vmem:[%s634_s3] ss:$0 sm:$0xff]  ;;  %v406_v46 = vld [vmem:[%s638_s7 + $0x18] sm:$0xff]  ;;  %v405_v47 = vld [vmem:[%s638_s7 + $0x10] sm:$0xff] }
   0xc   :  { %424 = vlog2.f32 %v547_v1  ;;  %194 = vmatpush.bf16.msra.mxu1 %v401_v20  ;;  %v419_v30 = vld [vmem:[%s635_s4] ss:$0 sm:$0xff]  ;;  %v404_v48 = vld [vmem:[%s638_s7 + $0x8] sm:$0xff] }
   0xd   :  { %v407_v45 = vld [vmem:[%s638_s7 + $0x20] sm:$0xff] }
   0xe   :  { %282 = vmatpush.bf16.msra.mxu2 %v409_v43  ;;  %v403_v49 = vld [vmem:[%s638_s7] sm:$0xff] }
   0xf   :  { %v420_v52 = vld [vmem:[%s637_s6] ss:$0 sm:$0xff] }
  0x10   :  { %195 = vmatpush.bf16.msra.mxu1 %v400_v21  ;;  %v421_v1 = vld [vmem:[%s639_s8] ss:$0 sm:$0xff] }
  0x11   :  { %v423_v4 = vpop.eup %422 }
  0x12   :  { %v55_v5 = vmul.f32 %v423_v4, %v53_v3  ;;  %vm61_vm1 = vweird.f32 %v423_v4  ;;  %v425_v9 = vpop.eup %424  ;;  %283 = vmatpush.bf16.msra.mxu2 %v408_v44 }
  0x13   :  { %vm62_vm2 = vmor %vm60_vm0, %vm61_vm1  ;;  %v69_v12 = vmul.f32 0.6931472, %v425_v9 }
  0x14   :  { %v56_v6 = vmul.f32 %v423_v4, %v55_v5  ;;  %196 = vmatpush.bf16.msra.mxu1 %v399_v22 }
  0x15   :  { %v70_v13 = vmul.f32 0.25, %v69_v12 }
  0x16   :  { %v57_v7 = vmul.f32 0.5, %v56_v6  ;;  %284 = vmatpush.bf16.msra.mxu2 %v407_v45 }
  0x18   :  { %v58_v8 = vsub.f32 1.5, %v57_v7  ;;  %197 = vmatpush.bf16.msra.mxu1 %v398_v23 }
  0x1a   :  { %v59_v10 = vmul.f32 %v423_v4, %v58_v8  ;;  %285 = vmatpush.bf16.msra.mxu2 %v406_v46 }
  0x1c   :  { %v552_v11 = vsel %vm62_vm2, %v423_v4, %v59_v10  ;;  %198 = vmatpush.bf16.msra.mxu1 %v397_v24 }
  0x1d   :  { %73 = vperm.xlu0 %416, %v552_v11   ;;  %v64_v50 = vmul.f32 0.25, %v552_v11  ;;  %v67_v56 = vmul.f32 %v66_v53, %v552_v11 }
  0x1e   :  { %286 = vmatpush.bf16.msra.mxu2 %v405_v47 }
  0x1f   :  { %v65_v51 = vmul.f32 %v64_v50, %v552_v11 }
  0x20   :  { %199 = vmatpush.bf16.msra.mxu1 %v396_v25 }
  0x21   :  { %296 = vperm.xlu1 %417, %v65_v51  }
  0x22   :  { %287 = vmatpush.bf16.msra.mxu2 %v404_v48 }
  0x24   :  { %200 = vmatpush.bf16.msra.mxu1 %v395_v26 }
  0x25   :  { %83 = vperm.xlu0 %416, %v70_v13  }
  0x26   :  { %288 = vmatpush.bf16.msra.mxu2 %v403_v49 }
  0x29   :  { %302 = vperm.xlu1 %417, %v67_v56  }
  0x8f   :  { %v74_v17 = vpop.permute.xlu0 %73 }
  0x90   :  { %v76_v18 = vmul.f32 %v74_v17, %v561_v16 }
  0x92   :  { %v77_v19 = vpack.c.bf16 %v76_v18, %v76_v18 }
  0x93   :  { %v297_v2 = vpop.permute.xlu1 %296 }
  0x94   :  { %329 = vmatmul.msk.bf16.vlgmr.msra.gmra.mxu0 %vm101_vm3, %v77_v19  ;;  %v299_v6 = vmul.f32 %v297_v2, %v561_v16 }
  0x97   :  { %v84_v28 = vpop.permute.xlu0 %83 }
  0x98   :  { %v89_v29 = vmul.f32 %v418_v27, %v84_v28 }
  0x9a   :  { %v94_v32 = vadd.f32 %v419_v30, %v89_v29 }
  0x9b   :  { %v303_v5 = vpop.permute.xlu1 %302 }
 0x111   :  { %v114_v33 = vpop.f32.mrf.mxu0 }
 0x112   :  { %v115_v34 = vadd.f32 %v114_v33, %v94_v32 }
 0x114   :  { %v118_v35 = vsub.f32 0.0, %v115_v34 }
 0x116   :  { %v119_v36 = vmul.f32 1.442695, %v118_v35 }
 0x118   :  { %426 = vpow2.f32 %v119_v36 }
 0x119   :  { %v116_v37 = vpop.f32.mrf.mxu0 }
 0x11e   :  { %v427_v38 = vpop.eup %426 }
 0x11f   :  { %v121_v39 = vadd.f32 1.0, %v427_v38 }
 0x121   :  { %428 = vrcp.f32 %v121_v39 }
 0x127   :  { %v429_v40 = vpop.eup %428 }
 0x128   :  { %v123_v41 = vmul.f32 %v429_v40, %v115_v34 }
 0x12a   :  { %v124_v42 = vpack.c.bf16 %v123_v41, %v123_v41 }
 0x12c   :  { %201 = vmatmul.bf16.vlgmr.msra.gmra.mxu1 %v124_v42 }
 0x1a9   :  { %v202_v54 = vpop.f32.mrf.mxu1 }
 0x1aa   :  { %v203_v55 = vadd.f32 %v420_v52, %v202_v54 }
 0x1ac   :  { %v206_v57 = vsub.f32 0.0, %v203_v55 }
 0x1ae   :  { %v207_v58 = vmul.f32 1.442695, %v206_v57 }
 0x1b0   :  { %430 = vpow2.f32 %v207_v58 }
 0x1b1   :  { %v204_v59 = vpop.f32.mrf.mxu1 }
 0x1b6   :  { %v431_v60 = vpop.eup %430 }
 0x1b7   :  { %v209_v61 = vadd.f32 1.0, %v431_v60 }
 0x1b9   :  { %432 = vrcp.f32 %v209_v61 }
 0x1bf   :  { %v433_v62 = vpop.eup %432 }
 0x1c0   :  { %v211_v63 = vmul.f32 %v433_v62, %v203_v55 }
 0x1c2   :  { %v212_v0 = vpack.c.bf16 %v211_v63, %v211_v63 }
 0x1c4   :  { %289 = vmatmul.bf16.vlgmr.msra.gmra.mxu2 %v212_v0 }
 0x247   :  { %v290_v3 = vpop.f32.mrf.mxu2 }
 0x248   :  { %v291_v4 = vadd.f32 %v421_v1, %v290_v3 }
 0x24a   :  { %v305_v7 = vmul.f32 %v303_v5, %v291_v4 }
 0x24c   :  { %v306_v8 = vadd.f32 %v305_v7, %v299_v6 }
 0x24e   :  { %307 = vst.msk [vmem:[#allocation5] sm:$0xff] %vm101_vm3, %v306_v8 }
 0x24f   :  { %v292_v9 = vpop.f32.mrf.mxu2  ;;  %318 = dma.vmem_to_hbm [thread:$0]  %s314_s29, 128, %s316_s11, [#allocation4]  }
 0x250   :  { %484 = dma.done.wait [#allocation4], 128  }
 0x251   :  { %485 = vsyncadd [#allocation4], 4294967168 }
 0x252   :  { %323 = vsyncpa [#allocation3], 1 }
 0x253   :  { %324 = vsyncpa [#allocation4], 1 }

</bundles_post_ra>
